<compile_context>
chip_gen: v6e
topology: v6e:2x2x1
jax: 0.10.0
libtpu: 0.0.40
codegen_flags: <defaults>
</compile_context>

<pallas_src>
import jax
import jax.numpy as jnp
from jax.experimental import pallas as pl
from jax.experimental.pallas import tpu as pltpu

BN_EPS = 1e-5
DP = 128          # lane-dense (padded) feature width: last dim of h / W / output


# -------------------------------------------------------------------------------------
# Fused kernel: one pallas_call for ALL GIN layers.
# -------------------------------------------------------------------------------------
def _encoder_kernel(adj_ref, h0_ref, w_ref, eps_ref, invn_ref, mask_ref,
                    g1_ref, b1_ref, g2_ref, b2_ref, out_ref):
    l = pl.program_id(0)

    # Layer 0: load the zero-padded input features into the resident carry buffer.
    @pl.when(l == 0)
    def _():
        out_ref[...] = h0_ref[...]

    h = out_ref[...]            # (Np, DP) f32; padded rows / channels are exactly 0
    inv_n = invn_ref[...]       # (1, 1)  == 1 / (#real nodes)
    mask = mask_ref[...]        # (Np, 1) 1.0 for real nodes, 0.0 for padded rows

    # GIN 'sum' aggregation with the self term folded into (adj + I); bf16 MXU path
    # (0/1 adjacency entries are exact in bf16):
    #     agg = (adj + I) @ h + eps * h   ==   (1 + eps) * h + adj @ h
    agg = jnp.dot(adj_ref[...], h.astype(jnp.bfloat16),
                  preferred_element_type=jnp.float32)
    agg = agg + eps_ref[...] * h

    # MLP with num_mlp_layers == 1  ->  a single Linear.  The bias is dropped: it
    # cancels exactly against the batch-mean subtraction of the BatchNorm below.
    z = jnp.dot(agg, w_ref[...], preferred_element_type=jnp.float32)

    def bn_relu(x, gamma, beta):
        # nn.BatchNorm1d, training mode (biased batch stats over REAL nodes only),
        # fused into scale/shift form; rsqrt goes to the EUP.
        s = jnp.sum(x, axis=0, keepdims=True)            # padded rows of x are 0
        sq = jnp.sum(x * x, axis=0, keepdims=True)
        mean = s * inv_n
        var = sq * inv_n - mean * mean
        scale = gamma * jax.lax.rsqrt(var + BN_EPS)
        shift = beta - mean * scale
        # row mask keeps padded rows exactly 0 so they never pollute later stats.
        return jnp.maximum(x * scale + shift, 0.0) * mask

    z = bn_relu(z, g1_ref[...], b1_ref[...])    # ApplyNodeFunc: BN + ReLU
    z = bn_relu(z, g2_ref[...], b2_ref[...])    # GIN outer:     BN + ReLU
    out_ref[...] = z                            # carried to the next layer


def _round_up(x, m):
    return ((x + m - 1) // m) * m


def encoder_forward(adj, features, layer_params):
    """_Encoder.forward(g, features, corrupt=False) — all GIN layers in one kernel."""
    n = adj.shape[0]
    d_in = features.shape[1]
    d_out = layer_params[0]["w"].shape[1]
    num_layers = len(layer_params)
    n_pad = max(_round_up(n, 8), 8)

    # ---- host-side packing (pad to lane-dense 128 channels, bf16 adj + I) ----
    adj_i = jnp.zeros((n_pad, n_pad), jnp.float32)
    adj_i = adj_i.at[:n, :n].set(adj + jnp.eye(n, dtype=jnp.float32))
    adj_i = adj_i.astype(jnp.bfloat16)                      # 0/1/2 entries: exact

    h0 = jnp.zeros((n_pad, DP), jnp.float32).at[:n, :d_in].set(features)

    def pad_w(w):
        return jnp.zeros((DP, DP), jnp.float32).at[:w.shape[0], :w.shape[1]].set(w)

    def pad_row(v):
        return jnp.zeros((1, DP), jnp.float32).at[:, :v.shape[1]].set(v)

    w_stack = jnp.stack([pad_w(p["w"]) for p in layer_params])            # (L,DP,DP)
    g1 = jnp.stack([pad_row(p["bn1_g"]) for p in layer_params])           # (L,1,DP)
    b1 = jnp.stack([pad_row(p["bn1_b"]) for p in layer_params])
    g2 = jnp.stack([pad_row(p["bn2_g"]) for p in layer_params])
    b2 = jnp.stack([pad_row(p["bn2_b"]) for p in layer_params])
    eps = jnp.stack([p["eps"].reshape(1, 1) for p in layer_params])       # (L,1,1)
    inv_n = jnp.full((1, 1), 1.0 / n, jnp.float32)
    row_mask = (jnp.arange(n_pad) < n).astype(jnp.float32)[:, None]       # (Np,1)

    # Resident VMEM budget (double-buffered worst case): bf16 adj + f32 h0/out +
    # one weight block + BN params.
    resident = 2 * (n_pad * n_pad * 2 + 2 * n_pad * DP * 4 + DP * DP * 4 + 4 * DP * 4)
    assert resident < 28 * 1024 * 1024, (
        "graph too large to keep the adjacency resident in VMEM; needs the tiled "
        "adjacency variant")
    # TODO(synk): for graphs whose bf16 adjacency exceeds scoped VMEM (~N>4k on
    # v7x), stream adj in row/column tiles (row axis 'parallel' for the 2 TCs)
    # with cross-row-tile BatchNorm statistics (global batch stats constraint).

    const2 = lambda l: (0, 0)
    per_layer = lambda l: (l, 0, 0)

    out = pl.pallas_call(
        _encoder_kernel,
        out_shape=jax.ShapeDtypeStruct((n_pad, DP), jnp.float32),
        grid=(num_layers,),
        in_specs=[
            pl.BlockSpec((n_pad, n_pad), const2),       # adj + I (bf16), resident
            pl.BlockSpec((n_pad, DP), const2),          # h0, resident
            pl.BlockSpec((None, DP, DP), per_layer),    # W_l   (streamed per layer)
            pl.BlockSpec((None, 1, 1), per_layer),      # eps_l
            pl.BlockSpec((1, 1), const2),               # 1 / n_real
            pl.BlockSpec((n_pad, 1), const2),           # real-node row mask
            pl.BlockSpec((None, 1, DP), per_layer),     # bn1 gamma
            pl.BlockSpec((None, 1, DP), per_layer),     # bn1 beta
            pl.BlockSpec((None, 1, DP), per_layer),     # bn2 gamma
            pl.BlockSpec((None, 1, DP), per_layer),     # bn2 beta
        ],
        out_specs=pl.BlockSpec((n_pad, DP), const2),    # h carried across layers
        compiler_params=pltpu.CompilerParams(
            dimension_semantics=("arbitrary",),         # layer axis is a carry
            vmem_limit_bytes=32 * 1024 * 1024),
    )(adj_i, h0, w_stack, eps, inv_n, row_mask, g1, b1, g2, b2)

    return out[:n, :d_out]


# ---------------- parameter construction (deterministic, PyTorch-style init) ----------
def init_params(key, in_feats, n_hidden, n_layers):
    params = []
    for layer in range(n_layers):
        d_in = in_feats if layer == 0 else n_hidden
        d_out = n_hidden
        key, kw, kb = jax.random.split(key, 3)
        bound = 1.0 / jnp.sqrt(jnp.float32(d_in))
        # stored already transposed: (d_in, d_out), so y = x @ w + b
        w = jax.random.uniform(kw, (d_in, d_out), jnp.float32, -bound, bound)
        b = jax.random.uniform(kb, (1, d_out), jnp.float32, -bound, bound)
        params.append(dict(
            eps=jnp.zeros((1,), jnp.float32),          # learn_eps=True, init 0.0
            w=w, b=b,
            bn1_g=jnp.ones((1, d_out), jnp.float32),   # BatchNorm1d default init
            bn1_b=jnp.zeros((1, d_out), jnp.float32),
            bn2_g=jnp.ones((1, d_out), jnp.float32),
            bn2_b=jnp.zeros((1, d_out), jnp.float32),
        ))
    return params


# ---------------- pure-JAX references for the correctness checks ----------------------
def _reference(adj, features, layer_params, *, bf16_agg=False):
    """Faithful f32 PyTorch-style reference; bf16_agg=True mirrors the kernel's
    bf16 neighbor-aggregation matmul (f32 accumulation)."""
    def bn_relu(x, gamma, beta):
        mean = jnp.mean(x, axis=0, keepdims=True)
        var = jnp.mean(jnp.square(x - mean), axis=0, keepdims=True)
        return jnp.maximum((x - mean) / jnp.sqrt(var + BN_EPS) * gamma + beta, 0.0)

    n = adj.shape[0]
    adj_i = adj + jnp.eye(n, dtype=jnp.float32)
    h = features
    for p in layer_params:
        if bf16_agg:
            agg = jnp.dot(adj_i.astype(jnp.bfloat16), h.astype(jnp.bfloat16),
                          preferred_element_type=jnp.float32) + p["eps"][0] * h
        else:
            agg = (1.0 + p["eps"][0]) * h + adj @ h
        z = agg @ p["w"] + p["b"]
        z = bn_relu(z, p["bn1_g"], p["bn1_b"])
        h = bn_relu(z, p["bn2_g"], p["bn2_b"])
    return h


if __name__ == "__main__":
    N, IN_FEATS, N_HIDDEN, N_LAYERS = 32, 16, 32, 2

    key = jax.random.PRNGKey(0)
    k_adj, k_feat, k_param = jax.random.split(key, 3)

    # random undirected graph as dense adjacency (float32, no self loops)
    adj = (jax.random.uniform(k_adj, (N, N)) < 0.3).astype(jnp.float32)
    adj = jnp.maximum(adj, adj.T) * (1.0 - jnp.eye(N, dtype=jnp.float32))

    features = jax.random.normal(k_feat, (N, IN_FEATS), jnp.float32)
    layer_params = init_params(k_param, IN_FEATS, N_HIDDEN, N_LAYERS)

    out = jax.block_until_ready(encoder_forward(adj, features, layer_params))
    assert out.shape == (N, N_HIDDEN)

    # (1) Algorithmic check against a reference that mirrors the kernel's bf16
    #     aggregation (catches any kernel logic error, which would be O(1)).
    ref_bf16 = _reference(adj, features, layer_params, bf16_agg=True)
    assert jnp.allclose(out, ref_bf16, atol=2e-2, rtol=2e-2), "kernel logic mismatch"

    # (2) Semantics check against the exact f32 PyTorch-style reference.  The
    #     kernel's neighbor aggregation runs on the bf16 MXU path (per the perf
    #     review), so compare the global relative error rather than elementwise.
    ref_f32 = _reference(adj, features, layer_params, bf16_agg=False)
    rel = jnp.linalg.norm(out - ref_f32) / jnp.linalg.norm(ref_f32)
    assert rel < 5e-2, f"relative error vs f32 reference too large: {rel}"

    print("KERNEL_OK")
</pallas_src>

<mosaic_0001>
module attributes {stable_mosaic.version = 11 : i64} {
  func.func @_encoder_kernel(%arg0: i32, %arg1: memref<32x32xbf16, #tpu.memory_space<vmem>>, %arg2: memref<32x128xf32, #tpu.memory_space<vmem>>, %arg3: memref<1x128x128xf32, #tpu.memory_space<vmem>>, %arg4: memref<1x1x1xf32, #tpu.memory_space<vmem>>, %arg5: memref<1x1xf32, #tpu.memory_space<vmem>>, %arg6: memref<32x1xf32, #tpu.memory_space<vmem>>, %arg7: memref<1x1x128xf32, #tpu.memory_space<vmem>>, %arg8: memref<1x1x128xf32, #tpu.memory_space<vmem>>, %arg9: memref<1x1x128xf32, #tpu.memory_space<vmem>>, %arg10: memref<1x1x128xf32, #tpu.memory_space<vmem>>, %arg11: memref<32x128xf32, #tpu.memory_space<vmem>>) attributes {dimension_semantics = [#tpu.dimension_semantics<arbitrary>], iteration_bounds = array<i64: 2>, scalar_prefetch = 0 : i64, scratch_operands = 0 : i64, tpu.core_type = #tpu.core_type<tc>, window_params = [{pipeline_mode = #tpu.pipeline_mode<synchronous>, transform_indices = @transform_0, window_bounds = array<i64: 32, 32>}, {pipeline_mode = #tpu.pipeline_mode<synchronous>, transform_indices = @transform_1, window_bounds = array<i64: 32, 128>}, {transform_indices = @transform_2, window_bounds = array<i64: 1, 128, 128>}, {transform_indices = @transform_3, window_bounds = array<i64: 1, 1, 1>}, {pipeline_mode = #tpu.pipeline_mode<synchronous>, transform_indices = @transform_4, window_bounds = array<i64: 1, 1>}, {pipeline_mode = #tpu.pipeline_mode<synchronous>, transform_indices = @transform_5, window_bounds = array<i64: 32, 1>}, {transform_indices = @transform_6, window_bounds = array<i64: 1, 1, 128>}, {transform_indices = @transform_7, window_bounds = array<i64: 1, 1, 128>}, {transform_indices = @transform_8, window_bounds = array<i64: 1, 1, 128>}, {transform_indices = @transform_9, window_bounds = array<i64: 1, 1, 128>}, {pipeline_mode = #tpu.pipeline_mode<synchronous>, transform_indices = @transform_10, window_bounds = array<i64: 32, 128>}]} {
    %c0_i32 = arith.constant 0 : i32
    %0 = arith.cmpi eq, %arg0, %c0_i32 : i32
    %1 = arith.extui %0 : i1 to i32
    %c0_i32_0 = arith.constant 0 : i32
    %2 = arith.cmpi ne, %1, %c0_i32_0 : i32
    scf.if %2 {
      %c0_37 = arith.constant 0 : index
      %c0_38 = arith.constant 0 : index
      %76 = vector.load %arg2[%c0_37, %c0_38] : memref<32x128xf32, #tpu.memory_space<vmem>>, vector<32x128xf32>
      %c0_39 = arith.constant 0 : index
      %c0_40 = arith.constant 0 : index
      %77 = vector.load %arg11[%c0_39, %c0_40] : memref<32x128xf32, #tpu.memory_space<vmem>>, vector<32x128xf32>
      tpu.vector_store %arg11[%c0_39, %c0_40], %76 {strides = array<i32>} : memref<32x128xf32, #tpu.memory_space<vmem>>, vector<32x128xf32>,
    } else {
    }
    %c0 = arith.constant 0 : index
    %c0_1 = arith.constant 0 : index
    %3 = vector.load %arg11[%c0, %c0_1] : memref<32x128xf32, #tpu.memory_space<vmem>>, vector<32x128xf32>
    %c0_2 = arith.constant 0 : index
    %c0_3 = arith.constant 0 : index
    %4 = vector.load %arg5[%c0_2, %c0_3] : memref<1x1xf32, #tpu.memory_space<vmem>>, vector<1x1xf32>
    %c0_4 = arith.constant 0 : index
    %c0_5 = arith.constant 0 : index
    %5 = vector.load %arg6[%c0_4, %c0_5] : memref<32x1xf32, #tpu.memory_space<vmem>>, vector<32x1xf32>
    %c0_6 = arith.constant 0 : index
    %c0_7 = arith.constant 0 : index
    %6 = vector.load %arg1[%c0_6, %c0_7] : memref<32x32xbf16, #tpu.memory_space<vmem>>, vector<32x32xbf16>
    %7 = arith.truncf %3 : vector<32x128xf32> to vector<32x128xbf16>
    %cst = arith.constant dense<0.000000e+00> : vector<32x128xf32>
    %8 = tpu.matmul %6, %7, %cst {dimension_numbers = #tpu.dot_dimension_numbers<[1], [0], [0], [1], [0, 0, 1, 1], [], []>} : vector<32x32xbf16>, vector<32x128xbf16>, vector<32x128xf32> -> vector<32x128xf32>
    %c0_8 = arith.constant 0 : index
    %c0_9 = arith.constant 0 : index
    %c0_10 = arith.constant 0 : index
    %9 = vector.load %arg4[%c0_8, %c0_9, %c0_10] : memref<1x1x1xf32, #tpu.memory_space<vmem>>, vector<1x1x1xf32>
    %10 = vector.shape_cast %9 : vector<1x1x1xf32> to vector<1x1xf32>
    %11 = vector.broadcast %10 : vector<1x1xf32> to vector<32x128xf32>
    %12 = arith.mulf %11, %3 : vector<32x128xf32>
    %13 = arith.addf %8, %12 : vector<32x128xf32>
    %c0_11 = arith.constant 0 : index
    %c0_12 = arith.constant 0 : index
    %c0_13 = arith.constant 0 : index
    %14 = vector.load %arg3[%c0_11, %c0_12, %c0_13] : memref<1x128x128xf32, #tpu.memory_space<vmem>>, vector<1x128x128xf32>
    %15 = vector.shape_cast %14 : vector<1x128x128xf32> to vector<128x128xf32>
    %cst_14 = arith.constant dense<0.000000e+00> : vector<32x128xf32>
    %16 = tpu.matmul %13, %15, %cst_14 {dimension_numbers = #tpu.dot_dimension_numbers<[1], [0], [0], [1], [0, 0, 1, 1], [], []>} : vector<32x128xf32>, vector<128x128xf32>, vector<32x128xf32> -> vector<32x128xf32>
    %c0_15 = arith.constant 0 : index
    %c0_16 = arith.constant 0 : index
    %c0_17 = arith.constant 0 : index
    %17 = vector.load %arg7[%c0_15, %c0_16, %c0_17] : memref<1x1x128xf32, #tpu.memory_space<vmem>>, vector<1x1x128xf32>
    %18 = vector.shape_cast %17 : vector<1x1x128xf32> to vector<1x128xf32>
    %c0_18 = arith.constant 0 : index
    %c0_19 = arith.constant 0 : index
    %c0_20 = arith.constant 0 : index
    %19 = vector.load %arg8[%c0_18, %c0_19, %c0_20] : memref<1x1x128xf32, #tpu.memory_space<vmem>>, vector<1x1x128xf32>
    %20 = vector.shape_cast %19 : vector<1x1x128xf32> to vector<1x128xf32>
    %cst_21 = arith.constant dense<0.000000e+00> : vector<128xf32>
    %21 = vector.multi_reduction <add>, %16, %cst_21 [0] : vector<32x128xf32> to vector<128xf32>
    %22 = vector.shape_cast %21 : vector<128xf32> to vector<1x128xf32>
    %23 = arith.mulf %16, %16 : vector<32x128xf32>
    %cst_22 = arith.constant dense<0.000000e+00> : vector<128xf32>
    %24 = vector.multi_reduction <add>, %23, %cst_22 [0] : vector<32x128xf32> to vector<128xf32>
    %25 = vector.shape_cast %24 : vector<128xf32> to vector<1x128xf32>
    %26 = vector.broadcast %4 : vector<1x1xf32> to vector<1x128xf32>
    %27 = arith.mulf %22, %26 : vector<1x128xf32>
    %28 = vector.broadcast %4 : vector<1x1xf32> to vector<1x128xf32>
    %29 = arith.mulf %25, %28 : vector<1x128xf32>
    %30 = arith.mulf %27, %27 : vector<1x128xf32>
    %31 = arith.subf %29, %30 : vector<1x128xf32>
    %cst_23 = arith.constant 9.99999974E-6 : f32
    %32 = vector.broadcast %cst_23 : f32 to vector<1x128xf32>
    %33 = arith.addf %31, %32 : vector<1x128xf32>
    %34 = math.rsqrt %33 : vector<1x128xf32>
    %35 = arith.mulf %18, %34 : vector<1x128xf32>
    %36 = arith.mulf %27, %35 : vector<1x128xf32>
    %37 = arith.subf %20, %36 : vector<1x128xf32>
    %38 = vector.broadcast %35 : vector<1x128xf32> to vector<32x128xf32>
    %39 = arith.mulf %16, %38 : vector<32x128xf32>
    %40 = vector.broadcast %37 : vector<1x128xf32> to vector<32x128xf32>
    %41 = arith.addf %39, %40 : vector<32x128xf32>
    %cst_24 = arith.constant 0.000000e+00 : f32
    %42 = vector.broadcast %cst_24 : f32 to vector<32x128xf32>
    %43 = arith.maximumf %41, %42 : vector<32x128xf32>
    %44 = vector.broadcast %5 : vector<32x1xf32> to vector<32x128xf32>
    %45 = arith.mulf %43, %44 : vector<32x128xf32>
    %c0_25 = arith.constant 0 : index
    %c0_26 = arith.constant 0 : index
    %c0_27 = arith.constant 0 : index
    %46 = vector.load %arg9[%c0_25, %c0_26, %c0_27] : memref<1x1x128xf32, #tpu.memory_space<vmem>>, vector<1x1x128xf32>
    %47 = vector.shape_cast %46 : vector<1x1x128xf32> to vector<1x128xf32>
    %c0_28 = arith.constant 0 : index
    %c0_29 = arith.constant 0 : index
    %c0_30 = arith.constant 0 : index
    %48 = vector.load %arg10[%c0_28, %c0_29, %c0_30] : memref<1x1x128xf32, #tpu.memory_space<vmem>>, vector<1x1x128xf32>
    %49 = vector.shape_cast %48 : vector<1x1x128xf32> to vector<1x128xf32>
    %cst_31 = arith.constant dense<0.000000e+00> : vector<128xf32>
    %50 = vector.multi_reduction <add>, %45, %cst_31 [0] : vector<32x128xf32> to vector<128xf32>
    %51 = vector.shape_cast %50 : vector<128xf32> to vector<1x128xf32>
    %52 = arith.mulf %45, %45 : vector<32x128xf32>
    %cst_32 = arith.constant dense<0.000000e+00> : vector<128xf32>
    %53 = vector.multi_reduction <add>, %52, %cst_32 [0] : vector<32x128xf32> to vector<128xf32>
    %54 = vector.shape_cast %53 : vector<128xf32> to vector<1x128xf32>
    %55 = vector.broadcast %4 : vector<1x1xf32> to vector<1x128xf32>
    %56 = arith.mulf %51, %55 : vector<1x128xf32>
    %57 = vector.broadcast %4 : vector<1x1xf32> to vector<1x128xf32>
    %58 = arith.mulf %54, %57 : vector<1x128xf32>
    %59 = arith.mulf %56, %56 : vector<1x128xf32>
    %60 = arith.subf %58, %59 : vector<1x128xf32>
    %cst_33 = arith.constant 9.99999974E-6 : f32
    %61 = vector.broadcast %cst_33 : f32 to vector<1x128xf32>
    %62 = arith.addf %60, %61 : vector<1x128xf32>
    %63 = math.rsqrt %62 : vector<1x128xf32>
    %64 = arith.mulf %47, %63 : vector<1x128xf32>
    %65 = arith.mulf %56, %64 : vector<1x128xf32>
    %66 = arith.subf %49, %65 : vector<1x128xf32>
    %67 = vector.broadcast %64 : vector<1x128xf32> to vector<32x128xf32>
    %68 = arith.mulf %45, %67 : vector<32x128xf32>
    %69 = vector.broadcast %66 : vector<1x128xf32> to vector<32x128xf32>
    %70 = arith.addf %68, %69 : vector<32x128xf32>
    %cst_34 = arith.constant 0.000000e+00 : f32
    %71 = vector.broadcast %cst_34 : f32 to vector<32x128xf32>
    %72 = arith.maximumf %70, %71 : vector<32x128xf32>
    %73 = vector.broadcast %5 : vector<32x1xf32> to vector<32x128xf32>
    %74 = arith.mulf %72, %73 : vector<32x128xf32>
    %c0_35 = arith.constant 0 : index
    %c0_36 = arith.constant 0 : index
    %75 = vector.load %arg11[%c0_35, %c0_36] : memref<32x128xf32, #tpu.memory_space<vmem>>, vector<32x128xf32>
    tpu.vector_store %arg11[%c0_35, %c0_36], %74 {strides = array<i32>} : memref<32x128xf32, #tpu.memory_space<vmem>>, vector<32x128xf32>,
    return
  }
  func.func @transform_0(%arg0: i32) -> (i32, i32) {
    %c0_i32 = arith.constant 0 : i32
    %c0_i32_0 = arith.constant 0 : i32
    %c0_i32_1 = arith.constant 0 : i32
    return %c0_i32, %c0_i32_0 : i32, i32
  }
  func.func @transform_1(%arg0: i32) -> (i32, i32) {
    %c0_i32 = arith.constant 0 : i32
    %c0_i32_0 = arith.constant 0 : i32
    %c0_i32_1 = arith.constant 0 : i32
    return %c0_i32, %c0_i32_0 : i32, i32
  }
  func.func @transform_2(%arg0: i32) -> (i32, i32, i32) {
    %c0_i32 = arith.constant 0 : i32
    %c0_i32_0 = arith.constant 0 : i32
    %c0_i32_1 = arith.constant 0 : i32
    return %arg0, %c0_i32, %c0_i32_0 : i32, i32, i32
  }
  func.func @transform_3(%arg0: i32) -> (i32, i32, i32) {
    %c0_i32 = arith.constant 0 : i32
    %c0_i32_0 = arith.constant 0 : i32
    %c0_i32_1 = arith.constant 0 : i32
    return %arg0, %c0_i32, %c0_i32_0 : i32, i32, i32
  }
  func.func @transform_4(%arg0: i32) -> (i32, i32) {
    %c0_i32 = arith.constant 0 : i32
    %c0_i32_0 = arith.constant 0 : i32
    %c0_i32_1 = arith.constant 0 : i32
    return %c0_i32, %c0_i32_0 : i32, i32
  }
  func.func @transform_5(%arg0: i32) -> (i32, i32) {
    %c0_i32 = arith.constant 0 : i32
    %c0_i32_0 = arith.constant 0 : i32
    %c0_i32_1 = arith.constant 0 : i32
    return %c0_i32, %c0_i32_0 : i32, i32
  }
  func.func @transform_6(%arg0: i32) -> (i32, i32, i32) {
    %c0_i32 = arith.constant 0 : i32
    %c0_i32_0 = arith.constant 0 : i32
    %c0_i32_1 = arith.constant 0 : i32
    return %arg0, %c0_i32, %c0_i32_0 : i32, i32, i32
  }
  func.func @transform_7(%arg0: i32) -> (i32, i32, i32) {
    %c0_i32 = arith.constant 0 : i32
    %c0_i32_0 = arith.constant 0 : i32
    %c0_i32_1 = arith.constant 0 : i32
    return %arg0, %c0_i32, %c0_i32_0 : i32, i32, i32
  }
  func.func @transform_8(%arg0: i32) -> (i32, i32, i32) {
    %c0_i32 = arith.constant 0 : i32
    %c0_i32_0 = arith.constant 0 : i32
    %c0_i32_1 = arith.constant 0 : i32
    return %arg0, %c0_i32, %c0_i32_0 : i32, i32, i32
  }
  func.func @transform_9(%arg0: i32) -> (i32, i32, i32) {
    %c0_i32 = arith.constant 0 : i32
    %c0_i32_0 = arith.constant 0 : i32
    %c0_i32_1 = arith.constant 0 : i32
    return %arg0, %c0_i32, %c0_i32_0 : i32, i32, i32
  }
  func.func @transform_10(%arg0: i32) -> (i32, i32) {
    %c0_i32 = arith.constant 0 : i32
    %c0_i32_0 = arith.constant 0 : i32
    %c0_i32_1 = arith.constant 0 : i32
    return %c0_i32, %c0_i32_0 : i32, i32
  }
}

</mosaic_0001>

<bundles_post_ra>
// kernel: tpu_custom_call.1
= control target key start
LH: loop header
LB: loop body
LE: loop exit
PB: predicated region body
PF: predicated region fallthrough
CT: control target
= control target key end

     0   :  { %s1541_s0 = inlined_call_operand.hbm [shape: bf16[32,32], index: 0, kind: input, shape index: {}]   ;;  %s1542_s1 = inlined_call_operand.vmem [shape: f32[32,128], index: 1, kind: input, shape index: {}]   ;;  %s1543_s2 = inlined_call_operand.hbm [shape: f32[2,128,128], index: 2, kind: input, shape index: {}]   ;;  %s1544_s3 = inlined_call_operand.vmem [shape: f32[2,1,1], index: 3, kind: input, shape index: {}]   ;;  %s1545_s4 = inlined_call_operand.<no memory space> [shape: f32[1,1], index: 4, kind: input, shape index: {}]   ;;  %s1546_s5 = inlined_call_operand.vmem [shape: f32[32,1], index: 5, kind: input, shape index: {}]   ;;  %s1547_s6 = inlined_call_operand.vmem [shape: f32[2,1,128], index: 6, kind: input, shape index: {}]   ;;  %s1548_s7 = inlined_call_operand.vmem [shape: f32[2,1,128], index: 7, kind: input, shape index: {}]   ;;  %s1549_s8 = inlined_call_operand.vmem [shape: f32[2,1,128], index: 8, kind: input, shape index: {}]   ;;  %s1550_s9 = inlined_call_operand.vmem [shape: f32[2,1,128], index: 9, kind: input, shape index: {}]   ;;  %s1551_s10 = inlined_call_operand.hbm [shape: f32[32,128], index: 10, kind: output, shape index: {}]  }
   0x1   :  { %v15_v0 = vstv %s1545_s4 }
   0x2   :  { %16 = vst [vmem:[#allocation2] sm:$0x1] %v15_v0 }
   0x3   :  { %17 = vsyncpa [#allocation4], 0 }
   0x4   :  { %18 = vsyncpa [#allocation7], 0 }
   0x5   :  { %20 = vsyncpa [#allocation7 + $0x1], 0 }
   0x6   :  { %21 = vsyncpa [#allocation5], 0  ;;  %s1286_s15 = smov 0   ;;  %s1288_s16 = smov 0  }
   0x7   :  { %s1290_s17 = smov 0   ;;  %s1292_s18 = smov 0  }
   0x8 LB: > { %s1305_s4 = sadd.s32 4294967295, %s1216_s18   ;;  %p89_p0 = scmp.ne.s32.totalorder %s1208_s16, %s1204_s15  ;;  %s1216_s18 = sphi %s1292_s18, %s1567_s18   ;;  %s1212_s17 = sphi %s1290_s17, %s1570_s17   ;;  %s1208_s16 = sphi %s1288_s16, %s1569_s16   ;;  %s1204_s15 = sphi %s1286_s15, %s1568_s15  }
   0x9   : > { %p1554_p1 = scmp.eq.s32.totalorder %s1305_s4, 0  ;;  %p934_p2 = scmp.ge.s32.totalorder %s1216_s18, 1 }
   0xa   : > { %p293_p3 = scmp.lt.s32.totalorder %s1216_s18, 3  ;;  %s1218_s21 = smov [#allocation3]  }
   0xb   : > { %p1314_p5 = por %p1554_p1, %p89_p0  ;;  %s305_s22 = sshll.u32 %s1218_s21, 4  ;;  %s306_s22 = int_to_ptr.vmem [resolvable:$true] %s305_s22 }
   0xc   : > { %p1318_p6 = pnand %p934_p2, %p293_p3  ;;  %s1331_s24 = sadd.s32 1, %s1216_s18  }
   0xd   : > { %s1557_s19 = scalar_select %p1314_p5, 1, 0 }
   0xe   : > { %s1558_s20 = scalar_select %p1318_p6, 1, 0 }
   0xf   : > { %p1034_p7 = pneg %p1318_p6  ;;  %1560 = sst [smem:[#allocation12_spill]] %s1331_s24 }
  0x10   : > { %s76_s25 = sadd.s32 1, %s1212_s17  ;;  %s73_s26 = ssub.s32 %s1216_s18, %s1331_s24 }
  0x11   : > { %p1326_p8 = pnand %p1034_p7, %p1554_p1  ;;  %s1107_s27 = scalar_lea.vmem %s306_s22, 256 }
  0x12   : > { %p1108_p10 = scmp.ne.s32.totalorder %s306_s22, %s1107_s27  ;;  %p1115_p13 = scmp.lt.s32.totalorder %s306_s22, %s306_s22 }
  0x13   : > { %p1098_p9 = pneg %p1326_p8  ;;  %p1116_p0 = scmp.lt.s32.totalorder %s1107_s27, %s1107_s27 }
  0x15   : > { %p1110_p11 = pnand %p1108_p10, %p1098_p9  ;;  %p1117_p2 = por %p1116_p0, %p1115_p13 }
  0x17   : > { %p1111_p12 = pneg %p1110_p11 }
  0x19   : > { %p1118_p3 = pnand %p1117_p2, %p1111_p12 }
  0x1b   : > { %1121 = shalt.err (!%p1118_p3)
}
  0x1c   : > { %s1219_s28 = smov 64   ;;  %s1220_s29 = smov 4  }
  0x1d   : > { %1037 = dma.hbm_to_vmem [thread:$0]  (!%p1326_p8), %s1541_s0, 256, %s306_s22, [#allocation4], %s1219_s28, %s1219_s28, %s1220_s29  }
  0x1e   : > { %p74_p7 = scmp.eq.s32.totalorder %s73_s26, 0  ;;  %p83_p9 = scmp.ne.s32.totalorder %s1212_s17, %s1208_s16 }
  0x1f   : > { %p84_p10 = scmp.eq.s32.totalorder %s1216_s18, 0  ;;  %p1043_p11 = scmp.lt.s32.totalorder %s1216_s18, 2 }
  0x20   : > { %s1348_s12 = scalar_select %p74_p7, %s1212_s17, %s76_s25  }
  0x21   : > { %p85_p12 = por %p84_p10, %p83_p9  ;;  %s328_s13 = sand.u32 1, %s1212_s17  }
  0x22   : > { %s937_s14 = sshll.u32 %s328_s13, 7  ;;  %s953_s15 = sshll.u32 %s1216_s18, 11 }
  0x23   : > { %s1355_s24 = scalar_lea.hbm %s1543_s2, %s953_s15  ;;  %s332_s23 = scalar_lea.vmem [#allocation6], %s937_s14 }
  0x24   : > { %s339_s22 = sshll.u32 %s332_s23, 4  ;;  %p1359_p8 = pnand %p1043_p11, %p85_p12  ;;  %s1357_s22 = int_to_ptr.vmem [resolvable:$true] %s339_s22 }
  0x25   : > { %s1363_s25 = scalar_lea.sflag [#allocation7], %s328_s13  ;;  %s1122_s18 = scalar_lea.hbm %s1355_s24, 2048 }
  0x26   : > { %p1123_p13 = scmp.ne.s32.totalorder %s1355_s24, %s1122_s18  ;;  %p1124_p0 = pneg %p1359_p8 }
  0x27   : > { %s1127_s30 = scalar_lea.hbm %s1543_s2, 4096  ;;  %p1128_p7 = scmp.lt.s32.totalorder %s1355_s24, %s1543_s2 }
  0x28   : > { %p1125_p2 = pnand %p1124_p0, %p1123_p13  ;;  %p1129_p9 = scmp.lt.s32.totalorder %s1127_s30, %s1122_s18 }
  0x2a   : > { %p1126_p3 = pneg %p1125_p2  ;;  %p1130_p10 = por %p1129_p9, %p1128_p7 }
  0x2c   : > { %p1131_p11 = pnand %p1130_p10, %p1126_p3 }
  0x2e   : > { %1134 = shalt.err (!%p1131_p11)
}
  0x2f   : > { %s1135_s13 = scalar_lea.vmem %s1357_s22, 2048  ;;  %s1221_s15 = smov [#allocation6]  }
  0x30   : > { %p1136_p12 = scmp.ne.s32.totalorder %s1357_s22, %s1135_s13  ;;  %s1140_s21 = sshll.u32 %s1221_s15, 4  ;;  %s1141_s21 = int_to_ptr.vmem [resolvable:$false] %s1140_s21 }
  0x31   : > { %s1142_s27 = scalar_lea.vmem %s1141_s21, 4096  ;;  %p1143_p2 = scmp.lt.s32.totalorder %s1357_s22, %s1141_s21 }
  0x32   : > { %p1138_p4 = pnand %p1136_p12, %p1124_p0  ;;  %p1144_p1 = scmp.lt.s32.totalorder %s1142_s27, %s1135_s13 }
  0x34   : > { %p1139_p13 = pneg %p1138_p4  ;;  %p1145_p5 = por %p1144_p1, %p1143_p2 }
  0x36   : > { %p1146_p6 = pnand %p1145_p5, %p1139_p13 }
  0x38   : > { %1149 = shalt.err (!%p1146_p6)
}
  0x39   : > { %s1222_s23 = smov 128   ;;  %s1223_s18 = smov 8  }
  0x3a   : > { %1041 = dma.hbm_to_vmem [thread:$0]  (!%p1359_p8), %s1355_s24, 2048, %s1357_s22, %s1363_s25, %s1222_s23, %s1222_s23, %s1223_s18  }
  0x3b   : > { %p1562_p0 = scmp.ne.s32.totalorder %s1558_s20, 0 }
  0x3c   : > { %p1563_p4 = scmp.eq.s32.totalorder (!%p1562_p0), %s1305_s4, 0 }
  0x3d   : > { %381 = sbr.rel (%p1562_p0) target bundleno = 612 (0x264), region = 60 }
  0x42   : > { %1191 = dma.done.wait (%p1563_p4), [#allocation4], 256   ;;  %p1564_p3 = pmov %p1563_p4 }
  0x43   : > { %s387_s28 = sand.u32 1, %s1208_s16   ;;  %p1565_p1 = scmp.ne.s32.totalorder %s1557_s19, 0 }
  0x44   : > { %1193 = vsyncadd (%p1564_p3), [#allocation4], 4294967040  ;;  %s942_s29 = sshll.u32 %s387_s28, 7  ;;  %s388_s30 = scalar_lea.sflag [#allocation7], %s387_s28 }
  0x45   : > { %s1391_s11 = scalar_lea.vmem [#allocation6], %s942_s29 }
  0x46   : > { %1195 = dma.done.wait (%p1565_p1), %s388_s30, 2048  }
  0x47   : > { %1197 = vsyncadd (%p1565_p1), %s388_s30, 4294965248  ;;  %p438_p5 = scmp.lt.s32.totalorder %s1305_s4, 1  ;;  %p1566_p6 = scmp.ne.s32.totalorder %s1305_s4, 0 }
  0x49   : > { %s1399_s20 = scalar_select %p438_p5, %s1305_s4, 1 }
  0x4a   : > { %457 = sbr.rel (%p1566_p6) target bundleno = 82 (0x52), region = 72 }
  0x4b   : > { %s440_s26 = scalar_lea.vmem %s1544_s3, %s1399_s20  ;;  %s443_s13 = scalar_lea.vmem %s1547_s6, %s1399_s20 }
  0x4c   : > { %s446_s21 = scalar_lea.vmem %s1548_s7, %s1399_s20  ;;  %s449_s18 = scalar_lea.vmem %s1549_s8, %s1399_s20 }
  0x4d   : > { %s452_s30 = scalar_lea.vmem %s1550_s9, %s1399_s20 }
  0x4f   : > { %v458_v1 = vld [vmem:[%s1542_s1] sm:$0xff]  ;;  %v459_v2 = vld [vmem:[%s1542_s1 + $0x8] sm:$0xff]  ;;  %v460_v3 = vld [vmem:[%s1542_s1 + $0x10] sm:$0xff] }
  0x50   : > { %462 = vst [vmem:[#allocation8] sm:$0xff] %v458_v1  ;;  %463 = vst [vmem:[#allocation8 + $0x8] sm:$0xff] %v459_v2  ;;  %v461_v4 = vld [vmem:[%s1542_s1 + $0x18] sm:$0xff] }
  0x51   : > { %464 = vst [vmem:[#allocation8 + $0x10] sm:$0xff] %v460_v3  ;;  %465 = vst [vmem:[#allocation8 + $0x18] sm:$0xff] %v461_v4 }
  0x52 PF: > { %vm505_vm0 = vcmask 261120   ;;  %v1224_v10 = vmov 0   ;;  %v1090_v12 = vld [vmem:[#allocation3] sm:$0xff]   ;;  %v944_v13 = vld [vmem:[%s440_s26] ss:$0 sm:$0xff]  ;;  %v576_v14 = vld [vmem:[%s1391_s11 + $0x78] sm:$0xff]  ;;  %v691_v59 = vlaneseq }
  0x53   : > { %1088 = vset.pattern.permute.xlu0 %v1224_v10  ;;  %1089 = vset.pattern.permute.xlu1 %v1224_v10  ;;  %v575_v15 = vld [vmem:[%s1391_s11 + $0x70] sm:$0xff]  ;;  %v470_v16 = vld [vmem:[#allocation2] sm:$0x1]  ;;  %v1091_v17 = vld [vmem:[#allocation3 + $0x8] sm:$0xff]   ;;  %p1045_p8 = scmp.eq.s32.totalorder %s1305_s4, 1 }
  0x54   : > { %982 = vmatprep.mubr.msk.bf16.mxu0 %vm505_vm0, %v1090_v12  ;;  %488 = vperm.xlu0 %1088, %v944_v13   ;;  %v574_v18 = vld [vmem:[%s1391_s11 + $0x68] sm:$0xff]  ;;  %v573_v19 = vld [vmem:[%s1391_s11 + $0x60] sm:$0xff]  ;;  %v572_v21 = vld [vmem:[%s1391_s11 + $0x58] sm:$0xff]  ;;  %v692_v1 = vshrl.u32 %v691_v59, 7 }
  0x55   : > { %986 = vmatprep.subr.mxu1 %v576_v14  ;;  %v473_v20 = vld [vmem:[%s1546_s5 + $0x10] sm:$0xff]  ;;  %v571_v22 = vld [vmem:[%s1391_s11 + $0x50] sm:$0xff]  ;;  %v570_v23 = vld [vmem:[%s1391_s11 + $0x48] sm:$0xff] }
  0x56   : > { %987 = vmatpush3.msra.mxu1 %v576_v14  ;;  %v569_v24 = vld [vmem:[%s1391_s11 + $0x40] sm:$0xff]  ;;  %v568_v25 = vld [vmem:[%s1391_s11 + $0x38] sm:$0xff]  ;;  %v567_v26 = vld [vmem:[%s1391_s11 + $0x30] sm:$0xff] }
  0x57   : > { %v1439_v7 = vld [vmem:[#allocation8] sm:$0xff]  ;;  %v1443_v9 = vld [vmem:[#allocation8 + $0x8] sm:$0xff]  ;;  %988 = vmatprep.subr.mxu1 %v575_v15  ;;  %v564_v29 = vld [vmem:[%s1391_s11 + $0x18] sm:$0xff] }
  0x58   : > { %v1435_v5 = vld [vmem:[#allocation8 + $0x10] sm:$0xff]  ;;  %v1437_v6 = vld [vmem:[#allocation8 + $0x18] sm:$0xff]  ;;  %v479_v11 = vpack.c.bf16 %v1443_v9, %v1439_v7  ;;  %688 = vperm.xlu0 %1088, %v470_v16   ;;  %989 = vmatpush3.msra.mxu1 %v575_v15  ;;  %v566_v27 = vld [vmem:[%s1391_s11 + $0x28] sm:$0xff] }
  0x59   : > { %v480_v8 = vpack.c.bf16 %v1437_v6, %v1435_v5  ;;  %990 = vmatprep.subr.mxu1 %v574_v18  ;;  %v565_v28 = vld [vmem:[%s1391_s11 + $0x20] sm:$0xff]  ;;  %v563_v30 = vld [vmem:[%s1391_s11 + $0x10] sm:$0xff]  ;;  %v562_v31 = vld [vmem:[%s1391_s11 + $0x8] sm:$0xff] }
  0x5a   : > { %991 = vmatpush3.msra.mxu1 %v574_v18  ;;  %v561_v32 = vld [vmem:[%s1391_s11] sm:$0xff]  ;;  %v471_v33 = vld [vmem:[%s1546_s5] sm:$0xff]  ;;  %v472_v34 = vld [vmem:[%s1546_s5 + $0x8] sm:$0xff] }
  0x5b   : > { %978 = vmatprep.subr.bf16.mxu0 %v480_v8  ;;  %992 = vmatprep.subr.mxu1 %v573_v19  ;;  %v474_v35 = vld [vmem:[%s1546_s5 + $0x18] sm:$0xff] }
  0x5c   : > { %979 = vmatpush3.bf16.msra.mxu0 %v480_v8  ;;  %740 = vperm.xlu0 %1088, %v473_v20  }
  0x5d   : > { %980 = vmatprep.subr.bf16.mxu0 %v479_v11  ;;  %993 = vmatpush3.msra.mxu1 %v573_v19 }
  0x5e   : > { %994 = vmatprep.subr.mxu1 %v572_v21  ;;  %730 = vperm.xlu1 %1089, %v471_v33  }
  0x5f   : > { %995 = vmatpush3.msra.mxu1 %v572_v21  ;;  %v662_v21 = vld [vmem:[%s443_s13] sm:$0x1] }
  0x60   : > { %981 = vmatpush3.bf16.msra.mxu0 %v479_v11  ;;  %996 = vmatprep.subr.mxu1 %v571_v22 }
  0x61   : > { %997 = vmatpush3.msra.mxu1 %v571_v22 }
  0x62   : > { %998 = vmatprep.subr.mxu1 %v570_v23  ;;  %735 = vperm.xlu1 %1089, %v472_v34  }
  0x63   : > { %983 = vmatmul.mubr.msk.bf16.vlgmr.msra.gmra.mxu0 %vm505_vm0, %v1091_v17  ;;  %999 = vmatpush3.msra.mxu1 %v570_v23 }
  0x64   : > { %1000 = vmatprep.subr.mxu1 %v569_v24 }
  0x65   : > { %1001 = vmatpush3.msra.mxu1 %v569_v24  ;;  %v663_v24 = vld [vmem:[%s446_s21] sm:$0x1] }
  0x66   : > { %1002 = vmatprep.subr.mxu1 %v568_v25  ;;  %745 = vperm.xlu1 %1089, %v474_v35  }
  0x67   : > { %1003 = vmatpush3.msra.mxu1 %v568_v25 }
  0x68   : > { %1004 = vmatprep.subr.mxu1 %v567_v26 }
  0x69   : > { %1005 = vmatpush3.msra.mxu1 %v567_v26 }
  0x6a   : > { %1006 = vmatprep.subr.mxu1 %v566_v27 }
  0x6b   : > { %1007 = vmatpush3.msra.mxu1 %v566_v27 }
  0x6c   : > { %1008 = vmatprep.subr.mxu1 %v565_v28 }
  0x6d   : > { %1009 = vmatpush3.msra.mxu1 %v565_v28 }
  0x6e   : > { %1010 = vmatprep.subr.mxu1 %v564_v29 }
  0x6f   : > { %1011 = vmatpush3.msra.mxu1 %v564_v29 }
  0x70   : > { %1012 = vmatprep.subr.mxu1 %v563_v30 }
  0x71   : > { %1013 = vmatpush3.msra.mxu1 %v563_v30 }
  0x72   : > { %1014 = vmatprep.subr.mxu1 %v562_v31 }
  0x73   : > { %1015 = vmatpush3.msra.mxu1 %v562_v31 }
  0x74   : > { %1016 = vmatprep.subr.mxu1 %v561_v32 }
  0x75   : > { %1017 = vmatpush3.msra.mxu1 %v561_v32 }
  0xcf   : > { %v489_v36 = vpop.permute.xlu0 %488 }
  0xd0   : > { %v491_v37 = vmul.f32 %v489_v36, %v1439_v7  ;;  %v492_v41 = vmul.f32 %v489_v36, %v1443_v9  ;;  %v493_v42 = vmul.f32 %v489_v36, %v1435_v5  ;;  %v494_v45 = vmul.f32 %v489_v36, %v1437_v6 }
  0xd1   : > { %v1481_v6 = vsub.s32 0, %v692_v1 }
  0xd3   : > { %v689_v11 = vpop.permute.xlu0 %688 }
  0xd4   : > { %v694_v12 = vrot.slane %v689_v11, %v1481_v6 }
  0xd9   : > { %v1494_v25 = vpop.permute.xlu1 %730 }
  0xdd   : > { %v1498_v34 = vpop.permute.xlu1 %735 }
 0x123   : > { %v984_v38 = vpop.f32.mrf.mxu0 }
 0x124   : > { %v555_v47 = vadd.f32 %v984_v38, %v493_v42 }
 0x125   : > { %v546_v39 = vpop.f32.mrf.mxu0 }
 0x126   : > { %v547_v40 = vadd.f32 %v546_v39, %v491_v37 }
 0x127   : > { %v985_v43 = vpop.f32.mrf.mxu0 }
 0x128   : > { %1018 = vmatprep.mubr.f32.mxu1 %v547_v40  ;;  %v558_v48 = vadd.f32 %v985_v43, %v494_v45  ;;  %v741_v43 = vpop.permute.xlu0 %740 }
 0x129   : > { %v549_v44 = vpop.f32.mrf.mxu0 }
 0x12a   : > { %v550_v46 = vadd.f32 %v549_v44, %v492_v41 }
 0x12c   : > { %1019 = vmatmul.mubr.f32.vlgmr.msra.gmra.mxu1 %v550_v46 }
 0x12d   : > { %1021 = vmatprep.mubr.f32.mxu1 %v555_v47  ;;  %v746_v47 = vpop.permute.xlu1 %745 }
 0x130   : > { %1022 = vmatmul.mubr.f32.gmra.mxu1 %v558_v48 }
 0x1ec   : > { %v1020_v49 = vpop.f32.mrf.mxu1 }
 0x1ed   : > { %v674_v53 = vmul.f32 %v1020_v49, %v1020_v49 }
 0x1ee   : > { %v643_v50 = vpop.f32.mrf.mxu1 }
 0x1ef   : > { %v673_v51 = vmul.f32 %v643_v50, %v643_v50  ;;  %v664_v54 = vadd.f32 %v1020_v49, %v643_v50 }
 0x1f0   : > { %v1023_v52 = vpop.f32.mrf.mxu1 }
 0x1f1   : > { %v677_v56 = vadd.f32 %v674_v53, %v673_v51  ;;  %v676_v60 = vmul.f32 %v1023_v52, %v1023_v52 }
 0x1f2   : > { %v653_v55 = vpop.f32.mrf.mxu1 }
 0x1f3   : > { %v665_v57 = vadd.f32 %v664_v54, %v653_v55  ;;  %v675_v58 = vmul.f32 %v653_v55, %v653_v55 }
 0x1f5   : > { %v666_v61 = vadd.f32 %v1023_v52, %v665_v57  ;;  %v678_v62 = vadd.f32 %v677_v56, %v675_v58 }
 0x1f7   : > { %v667_v63 = vrot.slane %v666_v61, 4  ;;  %v679_v0 = vadd.f32 %v678_v62, %v676_v60 }
 0x1f9   : > { %v668_v2 = vadd.f32 %v667_v63, %v666_v61  ;;  %v680_v3 = vrot.slane %v679_v0, 4 }
 0x1fb   : > { %v669_v4 = vrot.slane %v668_v2, 2  ;;  %v681_v5 = vadd.f32 %v680_v3, %v679_v0 }
 0x1fd   : > { %v670_v7 = vadd.f32 %v669_v4, %v668_v2  ;;  %v682_v8 = vrot.slane %v681_v5, 2 }
 0x1ff   : > { %v671_v9 = vrot.slane %v670_v7, 1  ;;  %v683_v10 = vadd.f32 %v682_v8, %v681_v5 }
 0x201   : > { %v672_v13 = vadd.f32 %v671_v9, %v670_v7  ;;  %v684_v14 = vrot.slane %v683_v10, 1 }
 0x203   : > { %v685_v15 = vadd.f32 %v684_v14, %v683_v10  ;;  %v695_v16 = vmul.f32 %v694_v12, %v672_v13  ;;  %v752_v14 = vld [vmem:[%s449_s18] sm:$0x1]  ;;  %s1225_s18 = smov [#allocation8]  }
 0x204   : > { %s823_s29 = sshll.u32 %s1225_s18, 4  ;;  %s824_s29 = int_to_ptr.vmem [resolvable:$true] %s823_s29 }
 0x205   : > { %v696_v17 = vmul.f32 %v694_v12, %v685_v15  ;;  %v697_v18 = vmul.f32 %v695_v16, %v695_v16  ;;  %s1150_s20 = scalar_lea.vmem %s824_s29, 512  ;;  %p1157_p11 = scmp.lt.s32.totalorder %s824_s29, %s824_s29 }
 0x206   : > { %p1151_p7 = scmp.ne.s32.totalorder %s824_s29, %s1150_s20  ;;  %p1158_p12 = scmp.lt.s32.totalorder %s1150_s20, %s1150_s20 }
 0x207   : > { %v698_v19 = vsub.f32 %v696_v17, %v697_v18  ;;  %v753_v17 = vld [vmem:[%s452_s30] sm:$0x1] }
 0x208   : > { %p1152_p9 = pnand %p1151_p7, %p1045_p8  ;;  %p1159_p13 = por %p1158_p12, %p1157_p11 }
 0x209   : > { %v699_v20 = vadd.f32 1e-05, %v698_v19 }
 0x20a   : > { %p1153_p10 = pneg %p1152_p9 }
 0x20b   : > { %1092 = vrsqrt.f32 %v699_v20 }
 0x20c   : > { %p1160_p2 = pnand %p1159_p13, %p1153_p10 }
 0x218   : > { %v1093_v22 = vpop.eup %1092 }
 0x219   : > { %v701_v23 = vmul.f32 %v1093_v22, %v662_v21 }
 0x21b   : > { %v702_v26 = vmul.f32 %v701_v23, %v695_v16  ;;  %v708_v27 = vrot.slane %v701_v23, %v1481_v6 }
 0x21d   : > { %v703_v28 = vsub.f32 %v663_v24, %v702_v26  ;;  %v712_v29 = vmul.f32 %v708_v27, %v653_v55  ;;  %v710_v31 = vmul.f32 %v708_v27, %v643_v50  ;;  %v711_v32 = vmul.f32 %v1020_v49, %v708_v27 }
 0x21e   : > { %v713_v33 = vmul.f32 %v1023_v52, %v708_v27 }
 0x21f   : > { %v718_v30 = vrot.slane %v703_v28, %v1481_v6 }
 0x221   : > { %v722_v35 = vadd.f32 %v718_v30, %v712_v29  ;;  %v720_v36 = vadd.f32 %v718_v30, %v710_v31  ;;  %v721_v37 = vadd.f32 %v718_v30, %v711_v32  ;;  %v723_v38 = vadd.f32 %v718_v30, %v713_v33 }
 0x223   : > { %v726_v39 = vmax.f32 %v722_v35, 0.0  ;;  %v724_v40 = vmax.f32 %v720_v36, 0.0  ;;  %v725_v41 = vmax.f32 %v721_v37, 0.0  ;;  %v727_v42 = vmax.f32 %v723_v38, 0.0 }
 0x225   : > { %v750_v44 = vmul.f32 %v741_v43, %v726_v39  ;;  %v748_v45 = vmul.f32 %v1494_v25, %v724_v40  ;;  %v749_v46 = vmul.f32 %v1498_v34, %v725_v41  ;;  %v751_v51 = vmul.f32 %v746_v47, %v727_v42 }
 0x227   : > { %v763_v48 = vmul.f32 %v748_v45, %v748_v45  ;;  %v754_v49 = vadd.f32 %v749_v46, %v748_v45  ;;  %v764_v50 = vmul.f32 %v749_v46, %v749_v46  ;;  %v765_v52 = vmul.f32 %v750_v44, %v750_v44 }
 0x228   : > { %v766_v56 = vmul.f32 %v751_v51, %v751_v51 }
 0x229   : > { %v767_v53 = vadd.f32 %v764_v50, %v763_v48  ;;  %v755_v54 = vadd.f32 %v754_v49, %v750_v44 }
 0x22b   : > { %v756_v55 = vadd.f32 %v755_v54, %v751_v51  ;;  %v768_v57 = vadd.f32 %v767_v53, %v765_v52 }
 0x22d   : > { %v757_v58 = vrot.slane %v756_v55, 4  ;;  %v769_v59 = vadd.f32 %v768_v57, %v766_v56 }
 0x22f   : > { %v758_v60 = vadd.f32 %v757_v58, %v756_v55  ;;  %v770_v61 = vrot.slane %v769_v59, 4 }
 0x231   : > { %v759_v62 = vrot.slane %v758_v60, 2  ;;  %v771_v63 = vadd.f32 %v770_v61, %v769_v59 }
 0x233   : > { %v760_v0 = vadd.f32 %v759_v62, %v758_v60  ;;  %v772_v1 = vrot.slane %v771_v63, 2 }
 0x235   : > { %v761_v2 = vrot.slane %v760_v0, 1  ;;  %v773_v3 = vadd.f32 %v772_v1, %v771_v63 }
 0x237   : > { %v762_v4 = vadd.f32 %v761_v2, %v760_v0  ;;  %v774_v5 = vrot.slane %v773_v3, 1 }
 0x239   : > { %v775_v7 = vadd.f32 %v774_v5, %v773_v3  ;;  %v776_v8 = vmul.f32 %v762_v4, %v694_v12 }
 0x23b   : > { %v777_v9 = vmul.f32 %v775_v7, %v694_v12  ;;  %v778_v10 = vmul.f32 %v776_v8, %v776_v8 }
 0x23d   : > { %v779_v11 = vsub.f32 %v777_v9, %v778_v10 }
 0x23f   : > { %v780_v13 = vadd.f32 1e-05, %v779_v11 }
 0x241   : > { %1094 = vrsqrt.f32 %v780_v13 }
 0x24e   : > { %v1095_v15 = vpop.eup %1094 }
 0x24f   : > { %v782_v16 = vmul.f32 %v1095_v15, %v752_v14 }
 0x251   : > { %v783_v18 = vmul.f32 %v782_v16, %v776_v8  ;;  %v789_v19 = vrot.slane %v782_v16, %v1481_v6 }
 0x253   : > { %v784_v12 = vsub.f32 %v753_v17, %v783_v18  ;;  %v791_v20 = vmul.f32 %v789_v19, %v748_v45  ;;  %v792_v21 = vmul.f32 %v789_v19, %v749_v46  ;;  %v793_v22 = vmul.f32 %v789_v19, %v750_v44 }
 0x254   : > { %v794_v23 = vmul.f32 %v789_v19, %v751_v51 }
 0x255   : > { %v799_v24 = vrot.slane %v784_v12, %v1481_v6 }
 0x257   : > { %v801_v26 = vadd.f32 %v799_v24, %v791_v20  ;;  %v802_v27 = vadd.f32 %v799_v24, %v792_v21  ;;  %v803_v28 = vadd.f32 %v799_v24, %v793_v22  ;;  %v804_v29 = vadd.f32 %v799_v24, %v794_v23 }
 0x259   : > { %v808_v30 = vmax.f32 %v804_v29, 0.0  ;;  %v805_v31 = vmax.f32 %v801_v26, 0.0  ;;  %v806_v32 = vmax.f32 %v802_v27, 0.0  ;;  %v807_v33 = vmax.f32 %v803_v28, 0.0 }
 0x25b   : > { %v812_v35 = vmul.f32 %v808_v30, %v746_v47  ;;  %v809_v36 = vmul.f32 %v805_v31, %v1494_v25  ;;  %v810_v37 = vmul.f32 %v806_v32, %v1498_v34  ;;  %v811_v38 = vmul.f32 %v807_v33, %v741_v43 }
 0x25d   : > { %816 = vst [vmem:[#allocation8 + $0x18] sm:$0xff] %v812_v35  ;;  %813 = vst [vmem:[#allocation8] sm:$0xff] %v809_v36 }
 0x25e   : > { %814 = vst [vmem:[#allocation8 + $0x8] sm:$0xff] %v810_v37  ;;  %815 = vst [vmem:[#allocation8 + $0x10] sm:$0xff] %v811_v38 }
 0x25f   : > { %1163 = shalt.err (!%p1160_p2)
}
 0x260   : > { %s1226_s30 = smov 128   ;;  %s1227_s24 = smov 8  }
 0x261   : > { %1031 = dma.vmem_to_hbm [thread:$0]  (%p1045_p8), %s824_s29, 512, %s1551_s10, [#allocation5], %s1226_s30, %s1226_s30, %s1227_s24  }
 0x262   : > { %1199 = dma.done.wait (%p1045_p8), [#allocation5], 512  }
 0x263   : > { %1201 = vsyncadd (%p1045_p8), [#allocation5], 4294966784 }
 0x264 PF: > { %s1567_s18 = sld [smem:[#allocation12_spill]]  ;;  %s1568_s15 = smov %s1208_s16 }
 0x265   : > { %s1569_s16 = smov %s1212_s17  ;;  %s1570_s17 = smov %s1348_s12 }
 0x26a   : > { %p24_p0 = scmp.ge.s32.totalorder %s1567_s18, 4  }
 0x26c   :  { %26 = sbr.rel (!%p24_p0) target bundleno = 8 (0x8), region = 121 }
 0x271   :  { %839 = vsyncpa [#allocation4], 1 }
 0x272   :  { %841 = vsyncpa [#allocation4 + $0x1], 1 }
 0x273   :  { %842 = vsyncpa [#allocation7], 1 }
 0x274   :  { %844 = vsyncpa [#allocation7 + $0x1], 1 }
 0x275   :  { %845 = vsyncpa [#allocation5], 1 }
 0x276   :  { %847 = vsyncpa [#allocation5 + $0x1], 1 }

</bundles_post_ra>
